<compile_context>
chip_gen: v7x
topology: tpu7x:2x2x1
jax: 0.10.0
libtpu: 0.0.40
codegen_flags: <defaults>
</compile_context>

<pallas_src>
import functools

import jax
import jax.numpy as jnp
from jax.experimental import pallas as pl
from jax.experimental.pallas import tpu as pltpu

_LANE = 128
_SUBLANE = 8
# Only split the batch across >=2 grid steps (for v7x's 2 TensorCores) once
# each tile would still have at least this many rows.
_MIN_ROWS_PER_CORE = 128


def _round_up(n, m):
    return ((n + m - 1) // m) * m


def _fused_mlp_kernel(x_ref, *refs, n_layers, compute_dtype):
    """refs = (w1, b1, w2, b2, ..., wn, bn, o_ref); params are VMEM-resident."""
    o_ref = refs[-1]
    param_refs = refs[:-1]
    h = x_ref[...]                                   # bf16 activations
    for i in range(n_layers):
        w_ref = param_refs[2 * i]
        b_ref = param_refs[2 * i + 1]
        acc = jnp.dot(h, w_ref[...], preferred_element_type=jnp.float32)
        acc = acc + b_ref[...]                       # f32 bias add, broadcast over rows
        if i < n_layers - 1:                         # ReLU between layers, not after last
            acc = jnp.maximum(acc, 0.0)
            h = acc.astype(compute_dtype)            # back to bf16 for the next MXU pass
        else:
            h = acc
    o_ref[...] = h.astype(o_ref.dtype)


def pad_params_for_kernel(params, compute_dtype=jnp.bfloat16):
    """Cast weights to bf16 and zero-pad hidden widths up to 128 lanes.

    Zero padding is exact under Linear+ReLU (padded weight rows/cols and bias
    entries are 0 and ReLU(0)=0).  The LAST layer's out_features is left
    unpadded so the kernel writes only the true output columns.  Biases stay
    f32 because the bias add happens on the f32 accumulator."""
    padded = []
    n_layers = len(params)
    prev_out_pad = None
    for idx, (w, b) in enumerate(params):
        in_f, out_f = w.shape
        in_pad = in_f if prev_out_pad is None else prev_out_pad
        out_pad = out_f if idx == n_layers - 1 else _round_up(out_f, _LANE)
        wp = jnp.zeros((in_pad, out_pad), compute_dtype)
        wp = wp.at[:in_f, :out_f].set(w.astype(compute_dtype))
        bp = jnp.zeros((1, out_pad), jnp.float32)
        bp = bp.at[0, :out_f].set(b.astype(jnp.float32))
        padded.append((wp, bp))
        prev_out_pad = out_pad
    return padded


def fused_mlp_pallas(x, padded_params, *, batch_tile=None):
    """Single fused pallas_call.  Tiles only the batch dim; every weight/bias
    is a full, VMEM-resident block with a constant index_map."""
    batch, in_f = x.shape
    out_dtype = x.dtype
    n_layers = len(padded_params)
    out_f = padded_params[-1][0].shape[1]
    compute_dtype = padded_params[0][0].dtype

    x = x.astype(compute_dtype)

    # --- batch tiling: pad only to 8 sublanes, pick the tile cdiv-style -----
    batch_pad8 = _round_up(batch, _SUBLANE)
    if batch_tile is None:
        # 256 matches the 2x256 MXU on v6e/v7x; fatter tiles amortize the
        # ~0.35us per-grid-step overhead for very large batches.
        batch_tile = 512 if batch_pad8 >= 4096 else 256
    num_tiles = pl.cdiv(batch_pad8, batch_tile)
    if num_tiles == 1 and batch_pad8 >= 2 * _MIN_ROWS_PER_CORE:
        num_tiles = 2                                # engage the 2nd TensorCore on v7x
    tb = _round_up(pl.cdiv(batch_pad8, num_tiles), _SUBLANE)
    batch_pad = tb * num_tiles                       # waste is at most a few rows now
    if batch_pad != batch:
        x = jnp.pad(x, ((0, batch_pad - batch), (0, 0)))

    flat_params = [a for wb in padded_params for a in wb]

    in_specs = [pl.BlockSpec((tb, in_f), lambda i: (i, 0))]
    for (w, b) in padded_params:
        # Constant index_map: each param is DMA'd into VMEM once and stays
        # resident across all batch tiles.
        # TODO(synk): single-buffer these constant blocks and/or add an
        # N-tiling (or K-reduction + f32 accumulator) grid axis once hidden
        # widths outgrow v7x's 64 MiB VMEM; full residency is right here.
        in_specs.append(pl.BlockSpec(w.shape, lambda i: (0, 0)))
        in_specs.append(pl.BlockSpec(b.shape, lambda i: (0, 0)))
    # True-width output (out_f == full array last dim => legal BlockSpec):
    # masked stores, but ~8x less HBM traffic than a 128-lane padded slab and
    # no wrapper column-slice copy afterwards.
    out_spec = pl.BlockSpec((tb, out_f), lambda i: (i, 0))

    # VMEM budget from the actual footprint (double-buffered x/out tiles,
    # resident params, f32 intermediates), clamped to be valid on every chip.
    itemsize = jnp.dtype(compute_dtype).itemsize
    param_bytes = sum(w.size * w.dtype.itemsize + b.size * b.dtype.itemsize
                      for w, b in padded_params)
    max_width = max(max(w.shape[1] for w, _ in padded_params), in_f)
    tile_bytes = tb * (in_f * itemsize + out_f * jnp.dtype(out_dtype).itemsize)
    act_bytes = 2 * tb * max_width * 4
    vmem_needed = 2 * (param_bytes + tile_bytes) + act_bytes
    vmem_limit = int(min(max(4 * vmem_needed, 16 * 1024 * 1024), 64 * 1024 * 1024))

    kernel = functools.partial(_fused_mlp_kernel, n_layers=n_layers,
                               compute_dtype=compute_dtype)
    out = pl.pallas_call(
        kernel,
        out_shape=jax.ShapeDtypeStruct((batch_pad, out_f), out_dtype),
        grid=(num_tiles,),
        in_specs=in_specs,
        out_specs=out_spec,
        compiler_params=pltpu.CompilerParams(
            dimension_semantics=("parallel",),   # megacore on v7x, neutral elsewhere
            vmem_limit_bytes=vmem_limit),
    )(x, *flat_params)
    return out if batch_pad == batch else out[:batch]


def init_params(units_per_layer, key):
    """Deterministic parameter init matching torch.nn.Linear shapes.

    torch.nn.Linear(layer_units, next_units) has weight (next, layer) and
    bias (next,); we store the weight transposed as (layer, next)."""
    params = []
    for layer_i in range(len(units_per_layer) - 1):
        fan_in = units_per_layer[layer_i]
        fan_out = units_per_layer[layer_i + 1]
        key, kw, kb = jax.random.split(key, 3)
        bound = 1.0 / jnp.sqrt(jnp.float32(fan_in))
        w = jax.random.uniform(kw, (fan_in, fan_out), jnp.float32,
                               minval=-bound, maxval=bound)
        b = jax.random.uniform(kb, (fan_out,), jnp.float32,
                               minval=-bound, maxval=bound)
        params.append((w, b))
    return params


@jax.jit
def torch_model_forward(features, padded_params):
    """Equivalent of TorchModel.forward: Linear layers with ReLU between every
    pair except after the final Linear — fused into one Pallas kernel."""
    return fused_mlp_pallas(features, padded_params)


def reference_forward(features, params):
    x = features
    n_layers = len(params)
    for i, (w, b) in enumerate(params):
        x = x @ w + b
        if i < n_layers - 1:
            x = jnp.maximum(x, 0.0)
    return x


if __name__ == "__main__":
    units_per_layer = [32, 64, 64, 16]   # 3 Linear layers, ReLU after first two
    batch = 12                           # exercises the sublane pad + row-slice path

    key = jax.random.PRNGKey(0)
    key, kx = jax.random.split(key)
    features = jax.random.normal(kx, (batch, units_per_layer[0]), jnp.float32)

    params = init_params(units_per_layer, key)
    padded_params = pad_params_for_kernel(params)   # one-time param prep (bf16 + pad)

    out = torch_model_forward(features, padded_params)
    out = jax.block_until_ready(out)

    ref = reference_forward(features, params)       # f32 reference
    assert out.shape == (batch, units_per_layer[-1])
    # bf16 weights/activations with f32 accumulation -> looser tolerance vs f32 ref.
    assert jnp.allclose(out, ref, atol=5e-2, rtol=5e-2)

    print("KERNEL_OK")
</pallas_src>

<mosaic_0001>
module attributes {stable_mosaic.version = 11 : i64} {
  func.func @_fused_mlp_kernel(%arg0: i32, %arg1: memref<16x32xbf16, #tpu.memory_space<vmem>>, %arg2: memref<32x128xbf16, #tpu.memory_space<vmem>>, %arg3: memref<1x128xf32, #tpu.memory_space<vmem>>, %arg4: memref<128x128xbf16, #tpu.memory_space<vmem>>, %arg5: memref<1x128xf32, #tpu.memory_space<vmem>>, %arg6: memref<128x16xbf16, #tpu.memory_space<vmem>>, %arg7: memref<1x16xf32, #tpu.memory_space<vmem>>, %arg8: memref<16x16xf32, #tpu.memory_space<vmem>>) attributes {dimension_semantics = [#tpu.dimension_semantics<parallel>], iteration_bounds = array<i64: 1>, scalar_prefetch = 0 : i64, scratch_operands = 0 : i64, tpu.core_type = #tpu.core_type<tc>, window_params = [{transform_indices = @transform_0, window_bounds = array<i64: 16, 32>}, {pipeline_mode = #tpu.pipeline_mode<synchronous>, transform_indices = @transform_1, window_bounds = array<i64: 32, 128>}, {pipeline_mode = #tpu.pipeline_mode<synchronous>, transform_indices = @transform_2, window_bounds = array<i64: 1, 128>}, {pipeline_mode = #tpu.pipeline_mode<synchronous>, transform_indices = @transform_3, window_bounds = array<i64: 128, 128>}, {pipeline_mode = #tpu.pipeline_mode<synchronous>, transform_indices = @transform_4, window_bounds = array<i64: 1, 128>}, {pipeline_mode = #tpu.pipeline_mode<synchronous>, transform_indices = @transform_5, window_bounds = array<i64: 128, 16>}, {pipeline_mode = #tpu.pipeline_mode<synchronous>, transform_indices = @transform_6, window_bounds = array<i64: 1, 16>}, {transform_indices = @transform_7, window_bounds = array<i64: 16, 16>}]} {
    %c0 = arith.constant 0 : index
    %c0_0 = arith.constant 0 : index
    %0 = vector.load %arg1[%c0, %c0_0] : memref<16x32xbf16, #tpu.memory_space<vmem>>, vector<16x32xbf16>
    %c0_1 = arith.constant 0 : index
    %c0_2 = arith.constant 0 : index
    %1 = vector.load %arg2[%c0_1, %c0_2] : memref<32x128xbf16, #tpu.memory_space<vmem>>, vector<32x128xbf16>
    %cst = arith.constant dense<0.000000e+00> : vector<16x128xf32>
    %2 = tpu.matmul %0, %1, %cst {dimension_numbers = #tpu.dot_dimension_numbers<[1], [0], [0], [1], [0, 0, 1, 1], [], []>} : vector<16x32xbf16>, vector<32x128xbf16>, vector<16x128xf32> -> vector<16x128xf32>
    %c0_3 = arith.constant 0 : index
    %c0_4 = arith.constant 0 : index
    %3 = vector.load %arg3[%c0_3, %c0_4] : memref<1x128xf32, #tpu.memory_space<vmem>>, vector<1x128xf32>
    %4 = vector.broadcast %3 : vector<1x128xf32> to vector<16x128xf32>
    %5 = arith.addf %2, %4 : vector<16x128xf32>
    %cst_5 = arith.constant 0.000000e+00 : f32
    %6 = vector.broadcast %cst_5 : f32 to vector<16x128xf32>
    %7 = arith.maximumf %5, %6 : vector<16x128xf32>
    %8 = arith.truncf %7 : vector<16x128xf32> to vector<16x128xbf16>
    %c0_6 = arith.constant 0 : index
    %c0_7 = arith.constant 0 : index
    %9 = vector.load %arg4[%c0_6, %c0_7] : memref<128x128xbf16, #tpu.memory_space<vmem>>, vector<128x128xbf16>
    %cst_8 = arith.constant dense<0.000000e+00> : vector<16x128xf32>
    %10 = tpu.matmul %8, %9, %cst_8 {dimension_numbers = #tpu.dot_dimension_numbers<[1], [0], [0], [1], [0, 0, 1, 1], [], []>} : vector<16x128xbf16>, vector<128x128xbf16>, vector<16x128xf32> -> vector<16x128xf32>
    %c0_9 = arith.constant 0 : index
    %c0_10 = arith.constant 0 : index
    %11 = vector.load %arg5[%c0_9, %c0_10] : memref<1x128xf32, #tpu.memory_space<vmem>>, vector<1x128xf32>
    %12 = vector.broadcast %11 : vector<1x128xf32> to vector<16x128xf32>
    %13 = arith.addf %10, %12 : vector<16x128xf32>
    %cst_11 = arith.constant 0.000000e+00 : f32
    %14 = vector.broadcast %cst_11 : f32 to vector<16x128xf32>
    %15 = arith.maximumf %13, %14 : vector<16x128xf32>
    %16 = arith.truncf %15 : vector<16x128xf32> to vector<16x128xbf16>
    %c0_12 = arith.constant 0 : index
    %c0_13 = arith.constant 0 : index
    %17 = vector.load %arg6[%c0_12, %c0_13] : memref<128x16xbf16, #tpu.memory_space<vmem>>, vector<128x16xbf16>
    %cst_14 = arith.constant dense<0.000000e+00> : vector<16x16xf32>
    %18 = tpu.matmul %16, %17, %cst_14 {dimension_numbers = #tpu.dot_dimension_numbers<[1], [0], [0], [1], [0, 0, 1, 1], [], []>} : vector<16x128xbf16>, vector<128x16xbf16>, vector<16x16xf32> -> vector<16x16xf32>
    %c0_15 = arith.constant 0 : index
    %c0_16 = arith.constant 0 : index
    %19 = vector.load %arg7[%c0_15, %c0_16] : memref<1x16xf32, #tpu.memory_space<vmem>>, vector<1x16xf32>
    %20 = vector.broadcast %19 : vector<1x16xf32> to vector<16x16xf32>
    %21 = arith.addf %18, %20 : vector<16x16xf32>
    %c0_17 = arith.constant 0 : index
    %c0_18 = arith.constant 0 : index
    %22 = vector.load %arg8[%c0_17, %c0_18] : memref<16x16xf32, #tpu.memory_space<vmem>>, vector<16x16xf32>
    tpu.vector_store %arg8[%c0_17, %c0_18], %21 {strides = array<i32>} : memref<16x16xf32, #tpu.memory_space<vmem>>, vector<16x16xf32>,
    return
  }
  func.func @transform_0(%arg0: i32) -> (i32, i32) {
    %c0_i32 = arith.constant 0 : i32
    %c0_i32_0 = arith.constant 0 : i32
    return %arg0, %c0_i32 : i32, i32
  }
  func.func @transform_1(%arg0: i32) -> (i32, i32) {
    %c0_i32 = arith.constant 0 : i32
    %c0_i32_0 = arith.constant 0 : i32
    %c0_i32_1 = arith.constant 0 : i32
    return %c0_i32, %c0_i32_0 : i32, i32
  }
  func.func @transform_2(%arg0: i32) -> (i32, i32) {
    %c0_i32 = arith.constant 0 : i32
    %c0_i32_0 = arith.constant 0 : i32
    %c0_i32_1 = arith.constant 0 : i32
    return %c0_i32, %c0_i32_0 : i32, i32
  }
  func.func @transform_3(%arg0: i32) -> (i32, i32) {
    %c0_i32 = arith.constant 0 : i32
    %c0_i32_0 = arith.constant 0 : i32
    %c0_i32_1 = arith.constant 0 : i32
    return %c0_i32, %c0_i32_0 : i32, i32
  }
  func.func @transform_4(%arg0: i32) -> (i32, i32) {
    %c0_i32 = arith.constant 0 : i32
    %c0_i32_0 = arith.constant 0 : i32
    %c0_i32_1 = arith.constant 0 : i32
    return %c0_i32, %c0_i32_0 : i32, i32
  }
  func.func @transform_5(%arg0: i32) -> (i32, i32) {
    %c0_i32 = arith.constant 0 : i32
    %c0_i32_0 = arith.constant 0 : i32
    %c0_i32_1 = arith.constant 0 : i32
    return %c0_i32, %c0_i32_0 : i32, i32
  }
  func.func @transform_6(%arg0: i32) -> (i32, i32) {
    %c0_i32 = arith.constant 0 : i32
    %c0_i32_0 = arith.constant 0 : i32
    %c0_i32_1 = arith.constant 0 : i32
    return %c0_i32, %c0_i32_0 : i32, i32
  }
  func.func @transform_7(%arg0: i32) -> (i32, i32) {
    %c0_i32 = arith.constant 0 : i32
    %c0_i32_0 = arith.constant 0 : i32
    return %arg0, %c0_i32 : i32, i32
  }
}

</mosaic_0001>

<bundles_post_ra>
// kernel: torch_model_forward.1
= control target key start
LH: loop header
LB: loop body
LE: loop exit
PB: predicated region body
PF: predicated region fallthrough
CT: control target
= control target key end

     0   :  { %v492_v1 = vmov 0.0   ;;  %vm493_vm0 = vmmov 0   ;;  %vm58_vm1 = vcmask 261120   ;;  %s639_s0 = inlined_call_operand.vmem [shape: bf16[16,32], index: 0, kind: input, shape index: {}]   ;;  %s640_s1 = inlined_call_operand.vmem [shape: bf16[32,128], index: 1, kind: input, shape index: {}]   ;;  %s641_s2 = inlined_call_operand.vmem [shape: f32[1,128], index: 2, kind: input, shape index: {}]   ;;  %s642_s3 = inlined_call_operand.vmem [shape: bf16[128,128], index: 3, kind: input, shape index: {}]   ;;  %s643_s4 = inlined_call_operand.vmem [shape: f32[1,128], index: 4, kind: input, shape index: {}]   ;;  %s644_s5 = inlined_call_operand.vmem [shape: bf16[128,16], index: 5, kind: input, shape index: {}]   ;;  %s645_s6 = inlined_call_operand.vmem [shape: f32[1,16], index: 6, kind: input, shape index: {}]   ;;  %s646_s7 = inlined_call_operand.hbm [shape: f32[16,16], index: 7, kind: output, shape index: {}]  }
   0x1   :  { %v449_v0 = vld [vmem:[%s640_s1] sm:$0xff]   ;;  %396 = vmatprep.subr.bf16.mxu0 %v492_v1  ;;  %404 = vmatprep.subr.bf16.mxu1 %v492_v1  ;;  %v450_v2 = vld [vmem:[%s640_s1 + $0x8] sm:$0xff]   ;;  %v454_v6 = vld [vmem:[%s642_s3 + $0x10] sm:$0xff]  }
   0x2   :  { %397 = vmatpush3.bf16.msra.mxu0 %v449_v0  ;;  %400 = vmatprep.mubr.msk.bf16.mxu0 %vm493_vm0, %v492_v1  ;;  %v452_v3 = vld [vmem:[%s642_s3] sm:$0xff]   ;;  %v453_v5 = vld [vmem:[%s642_s3 + $0x8] sm:$0xff]   ;;  %v455_v7 = vld [vmem:[%s642_s3 + $0x18] sm:$0xff]  }
   0x3   :  { %398 = vmatprep.subr.bf16.mxu0 %v492_v1  ;;  %420 = vmatprep.mubr.msk.bf16.mxu1 %vm493_vm0, %v492_v1  ;;  %v451_v4 = vld [vmem:[%s639_s0] sm:$0xff]  }
   0x4   :  { %405 = vmatpush3.bf16.msra.mxu1 %v452_v3 }
   0x5   :  { %406 = vmatprep.subr.bf16.mxu1 %v492_v1 }
   0x6   :  { %399 = vmatpush3.bf16.msra.mxu0 %v450_v2 }
   0x7   :  { %424 = vmatprep.subr.bf16.mxu0 %v492_v1 }
   0x8   :  { %407 = vmatpush3.bf16.msra.mxu1 %v453_v5 }
   0x9   :  { %401 = vmatmul.mubr.msk.bf16.vlgmr.msra.gmra.mrb[0].mxu0 %vm58_vm1, %v451_v4  ;;  %408 = vmatprep.subr.bf16.mxu1 %v492_v1 }
   0xa   :  { %440 = vmatprep.mubr.msk.bf16.mxu0 %vm493_vm0, %v492_v1 }
   0xc   :  { %409 = vmatpush3.bf16.msra.mxu1 %v454_v6 }
   0xd   :  { %410 = vmatprep.subr.bf16.mxu1 %v492_v1 }
   0xe   :  { %12 = vsyncpa [#allocation3], 0  ;;  %v456_v8 = vld [vmem:[%s642_s3 + $0x20] sm:$0xff]   ;;  %v457_v9 = vld [vmem:[%s642_s3 + $0x28] sm:$0xff]   ;;  %vm333_vm2 = vcmask 130048  }
   0xf   :  { %v458_v10 = vld [vmem:[%s642_s3 + $0x30] sm:$0xff]   ;;  %v459_v11 = vld [vmem:[%s642_s3 + $0x38] sm:$0xff]   ;;  %v460_v12 = vld [vmem:[%s644_s5] sm:$0xff]  }
  0x10   :  { %411 = vmatpush3.bf16.msra.mxu1 %v455_v7  ;;  %425 = vmatpush3.bf16.msra.mxu0 %v460_v12  ;;  %v461_v13 = vld [vmem:[%s644_s5 + $0x8] sm:$0xff]   ;;  %v462_v14 = vld [vmem:[%s644_s5 + $0x10] sm:$0xff]   ;;  %v463_v15 = vld [vmem:[%s644_s5 + $0x18] sm:$0xff]  }
  0x11   :  { %412 = vmatprep.subr.bf16.mxu1 %v492_v1  ;;  %426 = vmatprep.subr.bf16.mxu0 %v492_v1  ;;  %v464_v16 = vld [vmem:[%s644_s5 + $0x20] sm:$0xff]   ;;  %v465_v17 = vld [vmem:[%s644_s5 + $0x28] sm:$0xff]   ;;  %v466_v28 = vld [vmem:[%s644_s5 + $0x30] sm:$0xff]  }
  0x12   :  { %v352_v18 = vld [vmem:[%s641_s2] ss:$0 sm:$0xff]  ;;  %v467_v29 = vld [vmem:[%s644_s5 + $0x38] sm:$0xff]   ;;  %s494_s5 = smov [#allocation2]  }
  0x13   :  { %v357_v30 = vld [vmem:[%s643_s4] ss:$0 sm:$0xff]  ;;  %s341_s16 = sshll.u32 %s494_s5, 4  ;;  %s342_s16 = int_to_ptr.vmem [resolvable:$true] %s341_s16 }
  0x14   :  { %413 = vmatpush3.bf16.msra.mxu1 %v456_v8  ;;  %427 = vmatpush3.bf16.msra.mxu0 %v461_v13  ;;  %v366_v40 = vld [vmem:[%s645_s6] ss:$0 sm:$0xff]  ;;  %s468_s4 = scalar_lea.vmem %s342_s16, 256  ;;  %p473_p1 = scmp.lt.s32.totalorder %s342_s16, %s342_s16 }
  0x15   :  { %414 = vmatprep.subr.bf16.mxu1 %v492_v1  ;;  %428 = vmatprep.subr.bf16.mxu0 %v492_v1  ;;  %p469_p0 = scmp.ne.s32.totalorder %s342_s16, %s468_s4  ;;  %p474_p2 = scmp.lt.s32.totalorder %s468_s4, %s468_s4 }
  0x17   :  { %p475_p3 = por %p474_p2, %p473_p1 }
  0x18   :  { %415 = vmatpush3.bf16.msra.mxu1 %v457_v9  ;;  %429 = vmatpush3.bf16.msra.mxu0 %v462_v14 }
  0x19   :  { %416 = vmatprep.subr.bf16.mxu1 %v492_v1  ;;  %430 = vmatprep.subr.bf16.mxu0 %v492_v1  ;;  %p476_p4 = pnand %p475_p3, %p469_p0 }
  0x1c   :  { %417 = vmatpush3.bf16.msra.mxu1 %v458_v10  ;;  %431 = vmatpush3.bf16.msra.mxu0 %v463_v15 }
  0x1d   :  { %418 = vmatprep.subr.bf16.mxu1 %v492_v1  ;;  %432 = vmatprep.subr.bf16.mxu0 %v492_v1 }
  0x20   :  { %419 = vmatpush3.bf16.msra.mxu1 %v459_v11  ;;  %433 = vmatpush3.bf16.msra.mxu0 %v464_v16 }
  0x21   :  { %434 = vmatprep.subr.bf16.mxu0 %v492_v1 }
  0x24   :  { %435 = vmatpush3.bf16.msra.mxu0 %v465_v17 }
  0x25   :  { %436 = vmatprep.subr.bf16.mxu0 %v492_v1 }
  0x28   :  { %437 = vmatpush3.bf16.msra.mxu0 %v466_v28 }
  0x29   :  { %438 = vmatprep.subr.bf16.mxu0 %v492_v1 }
  0x2c   :  { %439 = vmatpush3.bf16.msra.mxu0 %v467_v29 }
  0xdc   :  { %v96_v19 = vpop.f32.mrb[0].mxu0 }
  0xdd   :  { %v97_v20 = vadd.f32 %v352_v18, %v96_v19  ;;  %v402_v21 = vpop.f32.mrb[1].mxu0 }
  0xde   :  { %v99_v22 = vpop.f32.mrb[2].mxu0 }
  0xdf   :  { %v100_v23 = vadd.f32 %v352_v18, %v99_v22  ;;  %v403_v24 = vpop.f32.mrb[3].mxu0  ;;  %v103_v25 = vmax.f32 %v97_v20, 0.0 }
  0xe1   :  { %v104_v26 = vmax.f32 %v100_v23, 0.0 }
  0xe3   :  { %v105_v27 = vpack.c.bf16 %v104_v26, %v103_v25 }
  0xe5   :  { %421 = vmatmul.mubr.bf16.vlgmr.msra.gmra.mrb[0].mxu1 %v105_v27 }
 0x1b8   :  { %v211_v31 = vpop.f32.mrb[0].mxu1 }
 0x1b9   :  { %v212_v32 = vadd.f32 %v357_v30, %v211_v31  ;;  %v422_v33 = vpop.f32.mrb[1].mxu1 }
 0x1ba   :  { %v214_v34 = vpop.f32.mrb[2].mxu1 }
 0x1bb   :  { %v215_v35 = vadd.f32 %v357_v30, %v214_v34  ;;  %v423_v36 = vpop.f32.mrb[3].mxu1  ;;  %v218_v37 = vmax.f32 %v212_v32, 0.0 }
 0x1bd   :  { %v219_v38 = vmax.f32 %v215_v35, 0.0 }
 0x1bf   :  { %v220_v39 = vpack.c.bf16 %v219_v38, %v218_v37 }
 0x1c1   :  { %441 = vmatmul.mubr.bf16.vlgmr.msra.gmra.mrb[4].mxu0 %v220_v39 }
 0x294   :  { %v326_v41 = vpop.f32.mrb[4].mxu0 }
 0x295   :  { %v327_v42 = vadd.f32 %v366_v40, %v326_v41  ;;  %v442_v43 = vpop.f32.mrb[5].mxu0 }
 0x296   :  { %v329_v44 = vpop.f32.mrb[6].mxu0 }
 0x297   :  { %334 = vst.msk [vmem:[#allocation2] sm:$0xff] %vm333_vm2, %v327_v42  ;;  %v330_v45 = vadd.f32 %v366_v40, %v329_v44  ;;  %v443_v46 = vpop.f32.mrb[7].mxu0 }
 0x299   :  { %335 = vst.msk [vmem:[#allocation2 + $0x8] sm:$0xff] %vm333_vm2, %v330_v45 }
 0x29a   :  { %479 = shalt.err (!%p476_p4)
}
 0x29b   :  { %s480_s18 = scalar_lea.hbm %s646_s7, 256 }
 0x29c   :  { %p481_p5 = scmp.ne.s32.totalorder %s646_s7, %s480_s18  ;;  %p484_p6 = scmp.lt.u32.totalorder %s480_s18, %s646_s7 }
 0x29e   :  { %p486_p7 = pnand %p484_p6, %p481_p5 }
 0x2a0   :  { %489 = shalt.err (!%p486_p7)
}
 0x2a1   :  { %s495_s23 = smov 128   ;;  %s496_s24 = smov 8  }
 0x2a2   :  { %347 = dma.vmem_to_hbm [thread:$0]  %s342_s16, 256, %s646_s7, [#allocation3], %s495_s23, %s495_s23, %s496_s24  }
 0x2a3   :  { %490 = dma.done.wait [#allocation3], 256  }
 0x2a4   :  { %491 = vsyncadd [#allocation3], 4294967040 }
 0x2a5   :  { %351 = vsyncpa [#allocation3], 1 }

</bundles_post_ra>
